<compile_context>
chip_gen: v5e
topology: v5e:2x2
jax: 0.10.0
libtpu: 0.0.40
codegen_flags: <defaults>
</compile_context>

<pallas_src>
import jax
import jax.numpy as jnp
import numpy as np
from jax.experimental import pallas as pl
from jax.experimental.pallas import tpu as pltpu


def _uu_agg_kernel(neighs_ref, user_ref,
                   w1n_ref, w1u_ref, b1_ref, w2_ref, b2_ref, w3t_ref, b3_ref,
                   out_ref):
    BN, K, D = neighs_ref.shape

    neighs = neighs_ref[...]                          # (BN, K, D) bf16
    x = neighs.reshape(BN * K, D)                     # flatten -> one big 2D matmul

    # relu(w_a1(cat(E, repeat(u)))): split the concat matmul into two matmuls.
    hu = jnp.dot(user_ref[...], w1u_ref[...],
                 preferred_element_type=jnp.float32)                 # (BN, D) f32
    hu = jnp.broadcast_to(hu[:, None, :], (BN, K, D)).reshape(BN * K, D)
    h1 = jnp.dot(x, w1n_ref[...], preferred_element_type=jnp.float32)
    h1 = jnp.maximum(h1 + hu + b1_ref[...], 0.0)                     # (BN*K, D) f32

    # relu(w_a2(.)): bf16 MXU operands, f32 accumulate, f32 elementwise.
    h2 = jnp.dot(h1.astype(jnp.bfloat16), w2_ref[...],
                 preferred_element_type=jnp.float32)
    h2 = jnp.maximum(h2 + b2_ref[...], 0.0)                          # (BN*K, D) f32

    # w_a3(.) -> per-neighbour scalar logit: VPU multiply + lane reduce instead
    # of a degenerate (D,1) MXU matmul.
    logits = jnp.sum(h2.reshape(BN, K, D) * w3t_ref[...][None, :, :], axis=-1)
    logits = logits + b3_ref[0]                                      # (BN, K)

    # softmax over the K neighbours (torch softmax dim=0 per node).
    m = jnp.max(logits, axis=-1, keepdims=True)
    e = jnp.exp(logits - m)
    denom = jnp.sum(e, axis=-1, keepdims=True)
    attn = e * pl.reciprocal(denom, approx=True)                     # (BN, K)

    # attentive weighted sum: (E.T @ a).T == sum_k a_k * E_k (f32 elementwise).
    agg = jnp.sum(attn[:, :, None] * neighs.astype(jnp.float32), axis=1)
    out_ref[...] = agg.astype(out_ref.dtype)


def _round_up(x, m):
    return (x + m - 1) // m * m


def user_user_aggregate(neighs_emb, user_emb, w1, b1, w2, b2, w3, b3,
                        *, block_nodes=256):
    """neighs_emb: (N, K, D), user_emb: (N, D); returns (N, D) float32."""
    N, K, D = neighs_emb.shape

    # Node-axis tile: multiple of 8 (sublane), small enough that the double
    # buffered bf16 neighbour tile stays far inside the 32 MiB VMEM budget.
    BN = min(block_nodes, _round_up(N, 8))
    N_pad = _round_up(N, BN)
    if N_pad != N:
        neighs_emb = jnp.pad(neighs_emb, ((0, N_pad - N), (0, 0), (0, 0)))
        user_emb = jnp.pad(user_emb, ((0, N_pad - N), (0, 0)))

    # bf16 MXU operand streams; biases / W3 row / softmax stay f32.
    neighs_bf = neighs_emb.astype(jnp.bfloat16)
    user_bf = user_emb.astype(jnp.bfloat16)
    w1n = w1[:D, :].astype(jnp.bfloat16)       # applied to neighbour half of concat
    w1u = w1[D:, :].astype(jnp.bfloat16)       # applied to repeated parent half
    w2b = w2.astype(jnp.bfloat16)
    b1r = b1.reshape(1, D).astype(jnp.float32)
    b2r = b2.reshape(1, D).astype(jnp.float32)
    w3t = w3.reshape(1, D).astype(jnp.float32)   # (D,1) -> (1,D) row vector
    b3r = b3.reshape(1).astype(jnp.float32)

    grid = (N_pad // BN,)
    out = pl.pallas_call(
        _uu_agg_kernel,
        out_shape=jax.ShapeDtypeStruct((N_pad, D), jnp.float32),
        grid_spec=pltpu.PrefetchScalarGridSpec(
            num_scalar_prefetch=0,
            grid=grid,
            in_specs=[
                pl.BlockSpec((BN, K, D), lambda i: (i, 0, 0)),       # neighbours
                pl.BlockSpec((BN, D), lambda i: (i, 0)),             # parent users
                pl.BlockSpec((D, D), lambda i: (0, 0)),              # W1[:D]
                pl.BlockSpec((D, D), lambda i: (0, 0)),              # W1[D:]
                pl.BlockSpec((1, D), lambda i: (0, 0)),              # b1
                pl.BlockSpec((D, D), lambda i: (0, 0)),              # W2
                pl.BlockSpec((1, D), lambda i: (0, 0)),              # b2
                pl.BlockSpec((1, D), lambda i: (0, 0)),              # W3^T
                pl.BlockSpec(memory_space=pltpu.MemorySpace.SMEM),   # b3 scalar
            ],
            out_specs=pl.BlockSpec((BN, D), lambda i: (i, 0)),
        ),
        compiler_params=pltpu.CompilerParams(
            dimension_semantics=("parallel",),       # independent node blocks
            vmem_limit_bytes=32 * 1024 * 1024,       # safe on v7x's 64 MiB VMEM
        ),
    )(neighs_bf, user_bf, w1n, w1u, b1r, w2b, b2r, w3t, b3r)
    return out[:N]


def _reference(neighs_emb, user_emb, w1, b1, w2, b2, w3, b3):
    """Pure-JAX f32 reference mirroring the PyTorch forward (eval mode)."""
    N, K, D = neighs_emb.shape
    u_rep = jnp.broadcast_to(user_emb[:, None, :], (N, K, D))
    cat = jnp.concatenate([neighs_emb, u_rep], axis=-1)              # (N, K, 2D)
    h1 = jax.nn.relu(cat @ w1 + b1)
    h2 = jax.nn.relu(h1 @ w2 + b2)
    logits = (h2 @ w3)[..., 0] + b3[0]                               # (N, K)
    attn = jax.nn.softmax(logits, axis=-1)                           # over neighbours
    return jnp.einsum('nk,nkd->nd', attn, neighs_emb)


if __name__ == "__main__":
    key = jax.random.PRNGKey(0)
    num_users = 64
    K = 8          # neighbours per node
    D = 32         # embedding_dim

    keys = jax.random.split(key, 10)
    # Deterministic synthetic parameters (user embedding table + the three Linears).
    user_table = jax.random.normal(keys[0], (num_users, D), jnp.float32) * 0.1
    w1 = jax.random.normal(keys[1], (2 * D, D), jnp.float32) * 0.1   # w_a1: (in=2D, out=D)
    b1 = jax.random.normal(keys[2], (D,), jnp.float32) * 0.1
    w2 = jax.random.normal(keys[3], (D, D), jnp.float32) * 0.1       # w_a2
    b2 = jax.random.normal(keys[4], (D,), jnp.float32) * 0.1
    w3 = jax.random.normal(keys[5], (D, 1), jnp.float32) * 0.1       # w_a3
    b3 = jax.random.normal(keys[6], (1,), jnp.float32) * 0.1

    for N in (8, 10):   # 10 exercises the node-axis padding / tail-slice path
        nodes = jax.random.randint(keys[7], (N,), 0, num_users)
        neighbours = jax.random.randint(keys[8], (N, K), 0, num_users)

        # Glue: embedding-table gathers (plain JAX indexing).
        neighs_emb = user_table[neighbours]        # (N, K, D)
        user_emb = user_table[nodes]               # (N, D)

        out = user_user_aggregate(neighs_emb, user_emb, w1, b1, w2, b2, w3, b3)
        out = jax.block_until_ready(out)

        ref = _reference(neighs_emb, user_emb, w1, b1, w2, b2, w3, b3)
        # bf16 MXU operands + approx reciprocal -> looser tolerance than pure f32.
        np.testing.assert_allclose(np.asarray(out), np.asarray(ref),
                                   rtol=2e-2, atol=2e-2)

    print("KERNEL_OK")
</pallas_src>

<mosaic_0001>
module attributes {stable_mosaic.version = 11 : i64} {
  func.func @_uu_agg_kernel(%arg0: i32, %arg1: memref<8x8x32xbf16, #tpu.memory_space<vmem>>, %arg2: memref<8x32xbf16, #tpu.memory_space<vmem>>, %arg3: memref<32x32xbf16, #tpu.memory_space<vmem>>, %arg4: memref<32x32xbf16, #tpu.memory_space<vmem>>, %arg5: memref<1x32xf32, #tpu.memory_space<vmem>>, %arg6: memref<32x32xbf16, #tpu.memory_space<vmem>>, %arg7: memref<1x32xf32, #tpu.memory_space<vmem>>, %arg8: memref<1x32xf32, #tpu.memory_space<vmem>>, %arg9: memref<1xf32, #tpu.memory_space<smem>>, %arg10: memref<8x32xf32, #tpu.memory_space<vmem>>) attributes {dimension_semantics = [#tpu.dimension_semantics<parallel>], iteration_bounds = array<i64: 1>, scalar_prefetch = 0 : i64, scratch_operands = 0 : i64, tpu.core_type = #tpu.core_type<tc>, window_params = [{transform_indices = @transform_0, window_bounds = array<i64: 8, 8, 32>}, {transform_indices = @transform_1, window_bounds = array<i64: 8, 32>}, {pipeline_mode = #tpu.pipeline_mode<synchronous>, transform_indices = @transform_2, window_bounds = array<i64: 32, 32>}, {pipeline_mode = #tpu.pipeline_mode<synchronous>, transform_indices = @transform_3, window_bounds = array<i64: 32, 32>}, {pipeline_mode = #tpu.pipeline_mode<synchronous>, transform_indices = @transform_4, window_bounds = array<i64: 1, 32>}, {pipeline_mode = #tpu.pipeline_mode<synchronous>, transform_indices = @transform_5, window_bounds = array<i64: 32, 32>}, {pipeline_mode = #tpu.pipeline_mode<synchronous>, transform_indices = @transform_6, window_bounds = array<i64: 1, 32>}, {pipeline_mode = #tpu.pipeline_mode<synchronous>, transform_indices = @transform_7, window_bounds = array<i64: 1, 32>}, {transform_indices = @transform_8, window_bounds = array<i64: 1>}, {transform_indices = @transform_9, window_bounds = array<i64: 8, 32>}]} {
    %c0 = arith.constant 0 : index
    %c0_0 = arith.constant 0 : index
    %c0_1 = arith.constant 0 : index
    %0 = vector.load %arg1[%c0, %c0_0, %c0_1] : memref<8x8x32xbf16, #tpu.memory_space<vmem>>, vector<8x8x32xbf16>
    %1 = vector.shape_cast %0 : vector<8x8x32xbf16> to vector<64x32xbf16>
    %c0_2 = arith.constant 0 : index
    %c0_3 = arith.constant 0 : index
    %2 = vector.load %arg2[%c0_2, %c0_3] : memref<8x32xbf16, #tpu.memory_space<vmem>>, vector<8x32xbf16>
    %c0_4 = arith.constant 0 : index
    %c0_5 = arith.constant 0 : index
    %3 = vector.load %arg4[%c0_4, %c0_5] : memref<32x32xbf16, #tpu.memory_space<vmem>>, vector<32x32xbf16>
    %cst = arith.constant dense<0.000000e+00> : vector<8x32xf32>
    %4 = tpu.matmul %2, %3, %cst {dimension_numbers = #tpu.dot_dimension_numbers<[1], [0], [0], [1], [0, 0, 1, 1], [], []>} : vector<8x32xbf16>, vector<32x32xbf16>, vector<8x32xf32> -> vector<8x32xf32>
    %5 = vector.shape_cast %4 : vector<8x32xf32> to vector<8x1x32xf32>
    %6 = vector.shape_cast %5 : vector<8x1x32xf32> to vector<8x1x32xf32>
    %7 = vector.broadcast %6 : vector<8x1x32xf32> to vector<8x8x32xf32>
    %8 = vector.shape_cast %7 : vector<8x8x32xf32> to vector<64x32xf32>
    %c0_6 = arith.constant 0 : index
    %c0_7 = arith.constant 0 : index
    %9 = vector.load %arg3[%c0_6, %c0_7] : memref<32x32xbf16, #tpu.memory_space<vmem>>, vector<32x32xbf16>
    %cst_8 = arith.constant dense<0.000000e+00> : vector<64x32xf32>
    %10 = tpu.matmul %1, %9, %cst_8 {dimension_numbers = #tpu.dot_dimension_numbers<[1], [0], [0], [1], [0, 0, 1, 1], [], []>} : vector<64x32xbf16>, vector<32x32xbf16>, vector<64x32xf32> -> vector<64x32xf32>
    %11 = arith.addf %10, %8 : vector<64x32xf32>
    %c0_9 = arith.constant 0 : index
    %c0_10 = arith.constant 0 : index
    %12 = vector.load %arg5[%c0_9, %c0_10] : memref<1x32xf32, #tpu.memory_space<vmem>>, vector<1x32xf32>
    %13 = vector.broadcast %12 : vector<1x32xf32> to vector<64x32xf32>
    %14 = arith.addf %11, %13 : vector<64x32xf32>
    %cst_11 = arith.constant 0.000000e+00 : f32
    %15 = vector.broadcast %cst_11 : f32 to vector<64x32xf32>
    %16 = arith.maximumf %14, %15 : vector<64x32xf32>
    %17 = arith.truncf %16 : vector<64x32xf32> to vector<64x32xbf16>
    %c0_12 = arith.constant 0 : index
    %c0_13 = arith.constant 0 : index
    %18 = vector.load %arg6[%c0_12, %c0_13] : memref<32x32xbf16, #tpu.memory_space<vmem>>, vector<32x32xbf16>
    %cst_14 = arith.constant dense<0.000000e+00> : vector<64x32xf32>
    %19 = tpu.matmul %17, %18, %cst_14 {dimension_numbers = #tpu.dot_dimension_numbers<[1], [0], [0], [1], [0, 0, 1, 1], [], []>} : vector<64x32xbf16>, vector<32x32xbf16>, vector<64x32xf32> -> vector<64x32xf32>
    %c0_15 = arith.constant 0 : index
    %c0_16 = arith.constant 0 : index
    %20 = vector.load %arg7[%c0_15, %c0_16] : memref<1x32xf32, #tpu.memory_space<vmem>>, vector<1x32xf32>
    %21 = vector.broadcast %20 : vector<1x32xf32> to vector<64x32xf32>
    %22 = arith.addf %19, %21 : vector<64x32xf32>
    %cst_17 = arith.constant 0.000000e+00 : f32
    %23 = vector.broadcast %cst_17 : f32 to vector<64x32xf32>
    %24 = arith.maximumf %22, %23 : vector<64x32xf32>
    %25 = vector.shape_cast %24 : vector<64x32xf32> to vector<8x8x32xf32>
    %c0_18 = arith.constant 0 : index
    %c0_19 = arith.constant 0 : index
    %26 = vector.load %arg8[%c0_18, %c0_19] : memref<1x32xf32, #tpu.memory_space<vmem>>, vector<1x32xf32>
    %27 = vector.shape_cast %26 : vector<1x32xf32> to vector<1x1x32xf32>
    %28 = vector.broadcast %27 : vector<1x1x32xf32> to vector<8x8x32xf32>
    %29 = arith.mulf %25, %28 : vector<8x8x32xf32>
    %cst_20 = arith.constant dense<0.000000e+00> : vector<8x8xf32>
    %30 = vector.multi_reduction <add>, %29, %cst_20 [2] : vector<8x8x32xf32> to vector<8x8xf32>
    %c0_21 = arith.constant 0 : index
    %31 = memref.load %arg9[%c0_21] : memref<1xf32, #tpu.memory_space<smem>>
    %32 = vector.broadcast %31 : f32 to vector<8x8xf32>
    %33 = arith.addf %30, %32 : vector<8x8xf32>
    %cst_22 = arith.constant dense<0xFF800000> : vector<8xf32>
    %34 = vector.multi_reduction <maximumf>, %33, %cst_22 [1] : vector<8x8xf32> to vector<8xf32>
    %35 = vector.shape_cast %34 : vector<8xf32> to vector<8x1xf32>
    %36 = vector.broadcast %35 : vector<8x1xf32> to vector<8x8xf32>
    %37 = arith.subf %33, %36 : vector<8x8xf32>
    %38 = math.exp %37 : vector<8x8xf32>
    %cst_23 = arith.constant dense<0.000000e+00> : vector<8xf32>
    %39 = vector.multi_reduction <add>, %38, %cst_23 [1] : vector<8x8xf32> to vector<8xf32>
    %40 = vector.shape_cast %39 : vector<8xf32> to vector<8x1xf32>
    %41 = tpu.reciprocal %40 {approx = true} : vector<8x1xf32> -> vector<8x1xf32>
    %42 = vector.broadcast %41 : vector<8x1xf32> to vector<8x8xf32>
    %43 = arith.mulf %38, %42 : vector<8x8xf32>
    %44 = vector.shape_cast %43 : vector<8x8xf32> to vector<8x8x1xf32>
    %45 = arith.extf %0 : vector<8x8x32xbf16> to vector<8x8x32xf32>
    %46 = vector.broadcast %44 : vector<8x8x1xf32> to vector<8x8x32xf32>
    %47 = arith.mulf %46, %45 : vector<8x8x32xf32>
    %cst_24 = arith.constant dense<0.000000e+00> : vector<8x32xf32>
    %48 = vector.multi_reduction <add>, %47, %cst_24 [1] : vector<8x8x32xf32> to vector<8x32xf32>
    %c0_25 = arith.constant 0 : index
    %c0_26 = arith.constant 0 : index
    %49 = vector.load %arg10[%c0_25, %c0_26] : memref<8x32xf32, #tpu.memory_space<vmem>>, vector<8x32xf32>
    tpu.vector_store %arg10[%c0_25, %c0_26], %48 {strides = array<i32>} : memref<8x32xf32, #tpu.memory_space<vmem>>, vector<8x32xf32>,
    return
  }
  func.func @transform_0(%arg0: i32) -> (i32, i32, i32) {
    %c0_i32 = arith.constant 0 : i32
    %c0_i32_0 = arith.constant 0 : i32
    %c0_i32_1 = arith.constant 0 : i32
    return %arg0, %c0_i32, %c0_i32_0 : i32, i32, i32
  }
  func.func @transform_1(%arg0: i32) -> (i32, i32) {
    %c0_i32 = arith.constant 0 : i32
    %c0_i32_0 = arith.constant 0 : i32
    return %arg0, %c0_i32 : i32, i32
  }
  func.func @transform_2(%arg0: i32) -> (i32, i32) {
    %c0_i32 = arith.constant 0 : i32
    %c0_i32_0 = arith.constant 0 : i32
    %c0_i32_1 = arith.constant 0 : i32
    return %c0_i32, %c0_i32_0 : i32, i32
  }
  func.func @transform_3(%arg0: i32) -> (i32, i32) {
    %c0_i32 = arith.constant 0 : i32
    %c0_i32_0 = arith.constant 0 : i32
    %c0_i32_1 = arith.constant 0 : i32
    return %c0_i32, %c0_i32_0 : i32, i32
  }
  func.func @transform_4(%arg0: i32) -> (i32, i32) {
    %c0_i32 = arith.constant 0 : i32
    %c0_i32_0 = arith.constant 0 : i32
    %c0_i32_1 = arith.constant 0 : i32
    return %c0_i32, %c0_i32_0 : i32, i32
  }
  func.func @transform_5(%arg0: i32) -> (i32, i32) {
    %c0_i32 = arith.constant 0 : i32
    %c0_i32_0 = arith.constant 0 : i32
    %c0_i32_1 = arith.constant 0 : i32
    return %c0_i32, %c0_i32_0 : i32, i32
  }
  func.func @transform_6(%arg0: i32) -> (i32, i32) {
    %c0_i32 = arith.constant 0 : i32
    %c0_i32_0 = arith.constant 0 : i32
    %c0_i32_1 = arith.constant 0 : i32
    return %c0_i32, %c0_i32_0 : i32, i32
  }
  func.func @transform_7(%arg0: i32) -> (i32, i32) {
    %c0_i32 = arith.constant 0 : i32
    %c0_i32_0 = arith.constant 0 : i32
    %c0_i32_1 = arith.constant 0 : i32
    return %c0_i32, %c0_i32_0 : i32, i32
  }
  func.func @transform_8(%arg0: i32) -> i32 {
    %c0_i32 = arith.constant 0 : i32
    %c0_i32_0 = arith.constant 0 : i32
    return %c0_i32 : i32
  }
  func.func @transform_9(%arg0: i32) -> (i32, i32) {
    %c0_i32 = arith.constant 0 : i32
    %c0_i32_0 = arith.constant 0 : i32
    return %arg0, %c0_i32 : i32, i32
  }
}

</mosaic_0001>

<bundles_post_ra>
// kernel: tpu_custom_call.1
= control target key start
LH: loop header
LB: loop body
LE: loop exit
PB: predicated region body
PF: predicated region fallthrough
CT: control target
= control target key end

     0   :  { %15 = vsyncpa [#allocation4], 0  ;;  %s1104_s0 = inlined_call_operand.hbm [shape: bf16[8,8,32], index: 0, kind: input, shape index: {}]   ;;  %s1105_s1 = inlined_call_operand.hbm [shape: bf16[8,32], index: 1, kind: input, shape index: {}]   ;;  %s1106_s2 = inlined_call_operand.hbm [shape: bf16[32,32], index: 2, kind: input, shape index: {}]   ;;  %s1107_s3 = inlined_call_operand.hbm [shape: bf16[32,32], index: 3, kind: input, shape index: {}]   ;;  %s1108_s4 = inlined_call_operand.vmem [shape: f32[1,32], index: 4, kind: input, shape index: {}]   ;;  %s1109_s5 = inlined_call_operand.hbm [shape: bf16[32,32], index: 5, kind: input, shape index: {}]   ;;  %s1110_s6 = inlined_call_operand.vmem [shape: f32[1,32], index: 6, kind: input, shape index: {}]   ;;  %s1111_s7 = inlined_call_operand.vmem [shape: f32[1,32], index: 7, kind: input, shape index: {}]   ;;  %s1112_s8 = inlined_call_operand.<no memory space> [shape: f32[1], index: 8, kind: input, shape index: {}]   ;;  %s1113_s9 = inlined_call_operand.hbm [shape: f32[8,32], index: 9, kind: output, shape index: {}]  }
   0x1   :  { %16 = vsyncpa [#allocation7], 0 }
   0x2   :  { %17 = vsyncpa [#allocation10], 0  ;;  %s37_s11 = sshll.u32 %s1105_s1, 4  ;;  %s38_s11 = int_to_ptr.hbm [resolvable:$true] %s37_s11 }
   0x3   :  { %18 = vsyncpa [#allocation5], 0  ;;  %s944_s12 = smov [#allocation6]   ;;  %s60_s16 = sshll.u32 %s1107_s3, 4  ;;  %s61_s16 = int_to_ptr.hbm [resolvable:$true] %s60_s16 }
   0x4   :  { %s39_s13 = sshll.u32 %s944_s12, 4  ;;  %s945_s17 = smov [#allocation9]   ;;  %s40_s13 = int_to_ptr.vmem [resolvable:$true] %s39_s13 }
   0x5   :  { %42 = dma.hbm_to_vmem [thread:$0]  %s38_s11, 64, %s40_s13, [#allocation7]  }
   0x6   :  { %s62_s18 = sshll.u32 %s945_s17, 4  ;;  %s23_s21 = sshll.u32 %s1104_s0, 4  ;;  %s63_s18 = int_to_ptr.vmem [resolvable:$true] %s62_s18  ;;  %s24_s21 = int_to_ptr.hbm [resolvable:$true] %s23_s21 }
   0x7   :  { %s946_s1 = smov 64   ;;  %s947_s22 = smov 4  }
   0x8   :  { %68 = dma.hbm_to_vmem [thread:$0]  %s61_s16, 256, %s63_s18, [#allocation10], %s946_s1, %s946_s1, %s947_s22  }
   0x9   :  { %s47_s25 = sshll.u32 %s1106_s2, 4  ;;  %s948_s26 = smov [#allocation3]   ;;  %s48_s25 = int_to_ptr.hbm [resolvable:$true] %s47_s25 }
   0xa   :  { %s25_s27 = sshll.u32 %s948_s26, 4  ;;  %s949_s3 = smov [#allocation8]   ;;  %s26_s27 = int_to_ptr.vmem [resolvable:$true] %s25_s27 }
   0xb   :  { %31 = dma.hbm_to_vmem [thread:$0]  %s24_s21, 512, %s26_s27, [#allocation4], %s946_s1, %s946_s1, %s947_s22  }
   0xc   :  { %s49_s28 = sshll.u32 %s949_s3, 4  ;;  %s75_s0 = sshll.u32 %s1109_s5, 4  ;;  %s50_s28 = int_to_ptr.vmem [resolvable:$true] %s49_s28  ;;  %s76_s0 = int_to_ptr.hbm [resolvable:$true] %s75_s0 }
   0xd   :  { %55 = dma.hbm_to_vmem [thread:$0]  %s48_s25, 256, %s50_s28, [#allocation7], %s946_s1, %s946_s1, %s947_s22  }
   0xe   :  { %s950_s10 = smov [#allocation11]  }
   0xf   :  { %s77_s11 = sshll.u32 %s950_s10, 4  ;;  %s78_s11 = int_to_ptr.vmem [resolvable:$true] %s77_s11 }
  0x10   :  { %83 = dma.hbm_to_vmem [thread:$0]  %s76_s0, 256, %s78_s11, [#allocation10], %s946_s1, %s946_s1, %s947_s22  }
  0x11   :  { %936 = dma.done.wait [#allocation4], 512  }
  0x12   :  { %937 = vsyncadd [#allocation4], 4294966784 }
  0x13   :  { %938 = dma.done.wait [#allocation7], 320  }
  0x14   :  { %939 = vsyncadd [#allocation7], 4294966976 }
  0x15   :  { %940 = dma.done.wait [#allocation10], 512  }
  0x16   :  { %941 = vsyncadd [#allocation10], 4294966784  ;;  %v752_v0 = vld [vmem:[#allocation8 + $0x8] sm:$0xff]  ;;  %v750_v1 = vld [vmem:[#allocation9 + $0x8] sm:$0xff]  ;;  %vm136_vm0 = vcmask 261120   ;;  %vm411_vm1 = vcmask 1041409  }
  0x17   :  { %231 = vmatpush.bf16.msra.mxu1 %v752_v0  ;;  %755 = vmatpush.bf16.msra.mxu3 %v752_v0  ;;  %v751_v2 = vld [vmem:[#allocation8] sm:$0xff]  ;;  %v749_v3 = vld [vmem:[#allocation9] sm:$0xff]  ;;  %v119_v6 = vld [vmem:[#allocation6] sm:$0xf]  ;;  %vm413_vm2 = vcmask 1042434   ;;  %vm415_vm3 = vcmask 1043459  }
  0x18   :  { %146 = vmatpush.bf16.msra.mxu0 %v750_v1  ;;  %v745_v4 = vld [vmem:[#allocation3] sm:$0xff]  ;;  %v746_v5 = vld [vmem:[#allocation3 + $0x8] sm:$0xff]  ;;  %v747_v7 = vld [vmem:[#allocation3 + $0x10] sm:$0xff]  ;;  %vm417_vm4 = vcmask 1044484   ;;  %vm419_vm5 = vcmask 1045509   ;;  %vm421_vm6 = vcmask 1046534  }
  0x19   :  { %v748_v8 = vld [vmem:[#allocation3 + $0x18] sm:$0xff]  ;;  %v754_v9 = vld [vmem:[#allocation11 + $0x8] sm:$0xff]  ;;  %v753_v10 = vld [vmem:[#allocation11] sm:$0xff]  ;;  %vm423_vm7 = vcmask 1047559   ;;  %vm426_vm8 = vcmask 64512   ;;  %s684_s18 = sshll.u32 %s1113_s9, 4  ;;  %s685_s18 = int_to_ptr.hbm [resolvable:$true] %s684_s18 }
  0x1a   :  { %757 = vmatpush.bf16.msra.mxu2 %v754_v9  ;;  %v771_v17 = vld [vmem:[%s1108_s4] ss:$0 sm:$0xff] }
  0x1b   :  { %232 = vmatpush.bf16.msra.mxu1 %v751_v2  ;;  %756 = vmatpush.bf16.msra.mxu3 %v751_v2  ;;  %v772_v1 = vld [vmem:[%s1110_s6] ss:$0 sm:$0xff] }
  0x1c   :  { %147 = vmatpush.bf16.msra.mxu0 %v749_v3 }
  0x1e   :  { %729 = vmatmul.msk.bf16.vlgmr.msra.gmra.mxu1 %vm136_vm0, %v745_v4  ;;  %730 = vmatmul.msk.bf16.vlgmr.msra.gmra.mxu3 %vm136_vm0, %v746_v5  ;;  %v773_v4 = vld [vmem:[%s1111_s7] ss:$0 sm:$0xff] }
  0x1f   :  { %704 = vmatmul.msk.bf16.vlgmr.msra.gmra.mxu0 %vm136_vm0, %v119_v6  ;;  %758 = vmatpush.bf16.msra.mxu2 %v753_v10 }
  0x20   :  { %316 = vmatpush.bf16.msrb.mxu0 %v754_v9 }
  0x24   :  { %317 = vmatpush.bf16.msrb.mxu0 %v753_v10 }
  0x2e   :  { %731 = vmatmul.msk.bf16.gmra.mxu3 %vm136_vm0, %v747_v7 }
  0x3e   :  { %732 = vmatmul.msk.bf16.gmra.mxu3 %vm136_vm0, %v748_v8 }
  0x9b   :  { %v234_v11 = vpop.f32.mrf.mxu1 }
  0x9c   :  { %v149_v12 = vpop.f32.mrf.mxu0 }
  0x9d   :  { %v154_v13 = vrot.slane %v149_v12, 1  ;;  %v161_v14 = vperm.slane %v149_v12, 0  ;;  %v155_v15 = vrot.slane %v149_v12, 2  ;;  %v156_v22 = vrot.slane %v149_v12, 3 }
  0x9e   :  { %v157_v38 = vrot.slane %v149_v12, 4  ;;  %v158_v42 = vrot.slane %v149_v12, 5  ;;  %v159_v51 = vrot.slane %v149_v12, 6  ;;  %v160_v55 = vrot.slane %v149_v12, 7 }
  0x9f   :  { %v235_v16 = vadd.f32 %v234_v11, %v161_v14  ;;  %v162_v18 = vperm.slane %v154_v13, 0  ;;  %v163_v20 = vperm.slane %v155_v15, 0  ;;  %v164_v29 = vperm.slane %v156_v22, 0 }
  0xa0   :  { %v165_v41 = vperm.slane %v157_v38, 0  ;;  %v166_v44 = vperm.slane %v158_v42, 0  ;;  %v167_v54 = vperm.slane %v159_v51, 0  ;;  %v168_v57 = vperm.slane %v160_v55, 0 }
  0xa1   :  { %v239_v19 = vpop.f32.mrf.mxu3  ;;  %v258_v21 = vadd.f32 %v771_v17, %v235_v16 }
  0xa2   :  { %v240_v26 = vadd.f32 %v239_v19, %v163_v20 }
  0xa3   :  { %v236_v23 = vpop.f32.mrf.mxu1  ;;  %v266_v28 = vmax.f32 %v258_v21, 0.0 }
  0xa4   :  { %v237_v24 = vadd.f32 %v236_v23, %v162_v18  ;;  %v151_v25 = vpop.f32.mrf.mxu0  ;;  %v260_v32 = vadd.f32 %v771_v17, %v240_v26 }
  0xa6   :  { %v259_v27 = vadd.f32 %v771_v17, %v237_v24  ;;  %v268_v36 = vmax.f32 %v260_v32, 0.0 }
  0xa8   :  { %v267_v30 = vmax.f32 %v259_v27, 0.0 }
  0xa9   :  { %v241_v31 = vpop.f32.mrf.mxu3 }
  0xaa   :  { %v274_v33 = vpack.c.bf16 %v267_v30, %v266_v28  ;;  %v242_v34 = vadd.f32 %v241_v31, %v164_v29 }
  0xac   :  { %v261_v35 = vadd.f32 %v771_v17, %v242_v34  ;;  %741 = vmatmul.msk.bf16.vlgmr.msrb.gmra.mxu0 %vm136_vm0, %v274_v33 }
  0xae   :  { %v269_v37 = vmax.f32 %v261_v35, 0.0 }
  0xb0   :  { %v275_v39 = vpack.c.bf16 %v269_v37, %v268_v36 }
  0xb1   :  { %v244_v40 = vpop.f32.mrf.mxu3 }
  0xb2   :  { %742 = vmatmul.msk.bf16.vlgmr.msra.gmra.mxu2 %vm136_vm0, %v275_v39  ;;  %v245_v43 = vadd.f32 %v244_v40, %v165_v41 }
  0xb4   :  { %v262_v46 = vadd.f32 %v771_v17, %v245_v43 }
  0xb6   :  { %v270_v49 = vmax.f32 %v262_v46, 0.0 }
  0xb9   :  { %v246_v45 = vpop.f32.mrf.mxu3 }
  0xba   :  { %v247_v47 = vadd.f32 %v246_v45, %v166_v44 }
  0xbc   :  { %v263_v48 = vadd.f32 %v771_v17, %v247_v47  ;;  %v401_v47 = vlaneseq }
  0xbe   :  { %v271_v50 = vmax.f32 %v263_v48, 0.0  ;;  %v384_v48 = vstv %s1112_s8  ;;  %s952_s8 = smov [#allocation12]  }
  0xbf   :  { %s682_s15 = sshll.u32 %s952_s8, 4  ;;  %s683_s15 = int_to_ptr.vmem [resolvable:$true] %s682_s15 }
  0xc0   :  { %v276_v52 = vpack.c.bf16 %v271_v50, %v270_v49 }
  0xc1   :  { %v249_v53 = vpop.f32.mrf.mxu3 }
  0xc2   :  { %743 = vmatmul.msk.bf16.gmra.mxu2 %vm136_vm0, %v276_v52  ;;  %v250_v56 = vadd.f32 %v249_v53, %v167_v54  ;;  %v1047_v53 = vand.u32 127, %v401_v47 }
  0xc4   :  { %v264_v59 = vadd.f32 %v771_v17, %v250_v56 }
  0xc6   :  { %v272_v62 = vmax.f32 %v264_v59, 0.0 }
  0xc9   :  { %v251_v58 = vpop.f32.mrf.mxu3 }
  0xca   :  { %v252_v60 = vadd.f32 %v251_v58, %v168_v57 }
  0xcc   :  { %v265_v61 = vadd.f32 %v771_v17, %v252_v60 }
  0xce   :  { %v273_v63 = vmax.f32 %v265_v61, 0.0 }
  0xd0   :  { %v277_v0 = vpack.c.bf16 %v273_v63, %v272_v62 }
  0xd2   :  { %744 = vmatmul.msk.bf16.gmra.mxu2 %vm136_vm0, %v277_v0 }
 0x129   :  { %v319_v2 = vpop.f32.mrf.mxu0 }
 0x12a   :  { %v320_v3 = vadd.f32 %v772_v1, %v319_v2 }
 0x12c   :  { %v339_v5 = vmax.f32 %v320_v3, 0.0 }
 0x12e   :  { %v351_v6 = vmul.f32 %v773_v4, %v339_v5 }
 0x130   :  { %v359_v7 = vsel %vm136_vm0, %v351_v6, 0.0 }
 0x131   :  { %v321_v8 = vpop.f32.mrf.mxu0  ;;  %360 = vadd.xlane.f32.xlu0 %v359_v7 }
 0x132   :  { %v322_v9 = vadd.f32 %v772_v1, %v321_v8 }
 0x134   :  { %v340_v10 = vmax.f32 %v322_v9, 0.0 }
 0x135   :  { %v324_v11 = vpop.f32.mrf.mxu2 }
 0x136   :  { %v325_v12 = vadd.f32 %v772_v1, %v324_v11  ;;  %v352_v13 = vmul.f32 %v773_v4, %v340_v10 }
 0x138   :  { %v341_v14 = vmax.f32 %v325_v12, 0.0  ;;  %v362_v15 = vsel %vm136_vm0, %v352_v13, 0.0 }
 0x139   :  { %363 = vadd.xlane.f32.xlu0 %v362_v15 }
 0x13a   :  { %v353_v16 = vmul.f32 %v773_v4, %v341_v14  ;;  %v951_v14 = vmov 0  }
 0x13b   :  { %770 = vset.pattern.permute.xlu2 %v951_v14  ;;  %769 = vset.pattern.permute.xlu1 %v951_v14 }
 0x13c   :  { %v365_v17 = vsel %vm136_vm0, %v353_v16, 0.0  ;;  %768 = vset.pattern.permute.xlu0 %v951_v14 }
 0x13d   :  { %v326_v18 = vpop.f32.mrf.mxu2  ;;  %366 = vadd.xlane.f32.xlu1 %v365_v17 }
 0x13e   :  { %v327_v19 = vadd.f32 %v772_v1, %v326_v18 }
 0x140   :  { %v342_v20 = vmax.f32 %v327_v19, 0.0 }
 0x142   :  { %v354_v21 = vmul.f32 %v773_v4, %v342_v20 }
 0x144   :  { %v368_v22 = vsel %vm136_vm0, %v354_v21, 0.0 }
 0x145   :  { %v329_v23 = vpop.f32.mrf.mxu2  ;;  %369 = vadd.xlane.f32.xlu1 %v368_v22 }
 0x146   :  { %v330_v24 = vadd.f32 %v772_v1, %v329_v23 }
 0x148   :  { %v343_v25 = vmax.f32 %v330_v24, 0.0 }
 0x14a   :  { %v355_v26 = vmul.f32 %v773_v4, %v343_v25 }
 0x14c   :  { %v371_v27 = vsel %vm136_vm0, %v355_v26, 0.0 }
 0x14d   :  { %v331_v28 = vpop.f32.mrf.mxu2  ;;  %372 = vadd.xlane.f32.xlu2 %v371_v27 }
 0x14e   :  { %v332_v29 = vadd.f32 %v772_v1, %v331_v28 }
 0x150   :  { %v344_v30 = vmax.f32 %v332_v29, 0.0 }
 0x152   :  { %v356_v31 = vmul.f32 %v773_v4, %v344_v30 }
 0x154   :  { %v374_v32 = vsel %vm136_vm0, %v356_v31, 0.0 }
 0x155   :  { %v334_v33 = vpop.f32.mrf.mxu2  ;;  %375 = vadd.xlane.f32.xlu2 %v374_v32 }
 0x156   :  { %v335_v34 = vadd.f32 %v772_v1, %v334_v33 }
 0x158   :  { %v345_v35 = vmax.f32 %v335_v34, 0.0 }
 0x15a   :  { %v357_v36 = vmul.f32 %v773_v4, %v345_v35 }
 0x15c   :  { %v377_v37 = vsel %vm136_vm0, %v357_v36, 0.0 }
 0x15d   :  { %v336_v38 = vpop.f32.mrf.mxu2  ;;  %378 = vadd.xlane.f32.xlu0 %v377_v37 }
 0x15e   :  { %v337_v39 = vadd.f32 %v772_v1, %v336_v38 }
 0x160   :  { %v346_v40 = vmax.f32 %v337_v39, 0.0 }
 0x162   :  { %v358_v41 = vmul.f32 %v773_v4, %v346_v40 }
 0x164   :  { %v380_v42 = vsel %vm136_vm0, %v358_v41, 0.0 }
 0x165   :  { %381 = vadd.xlane.f32.xlu1 %v380_v42 }
 0x1a4   :  { %v361_v43 = vpop.xlane.xlu0 %360 }
 0x1a5   :  { %v385_v54 = vadd.f32 %v384_v48, %v361_v43 }
 0x1a7   :  { %v403_v62 = vperm.slane %v385_v54, %v1047_v53 }
 0x1ac   :  { %v364_v46 = vpop.xlane.xlu0 %363 }
 0x1ad   :  { %v386_v50 = vadd.f32 %v384_v48, %v364_v46 }
 0x1af   :  { %v404_v58 = vperm.slane %v386_v50, %v1047_v53 }
 0x1b0   :  { %v367_v44 = vpop.xlane.xlu1 %366 }
 0x1b1   :  { %v387_v51 = vadd.f32 %v384_v48, %v367_v44  ;;  %v412_v1 = vsel %vm411_vm1, %v404_v58, %v403_v62 }
 0x1b3   :  { %v405_v60 = vperm.slane %v387_v51, %v1047_v53 }
 0x1b5   :  { %v414_v3 = vsel %vm413_vm2, %v405_v60, %v412_v1 }
 0x1b8   :  { %v370_v49 = vpop.xlane.xlu1 %369 }
 0x1b9   :  { %v388_v55 = vadd.f32 %v384_v48, %v370_v49 }
 0x1bb   :  { %v406_v63 = vperm.slane %v388_v55, %v1047_v53 }
 0x1bd   :  { %v416_v6 = vsel %vm415_vm3, %v406_v63, %v414_v3 }
 0x1c0   :  { %v373_v45 = vpop.xlane.xlu2 %372 }
 0x1c1   :  { %v389_v57 = vadd.f32 %v384_v48, %v373_v45 }
 0x1c3   :  { %v407_v0 = vperm.slane %v389_v57, %v1047_v53 }
 0x1c5   :  { %v418_v8 = vsel %vm417_vm4, %v407_v0, %v416_v6 }
 0x1c8   :  { %v376_v52 = vpop.xlane.xlu2 %375 }
 0x1c9   :  { %v390_v59 = vadd.f32 %v384_v48, %v376_v52 }
 0x1cb   :  { %v408_v2 = vperm.slane %v390_v59, %v1047_v53 }
 0x1cd   :  { %v420_v10 = vsel %vm419_vm5, %v408_v2, %v418_v8 }
 0x1d0   :  { %v379_v56 = vpop.xlane.xlu0 %378 }
 0x1d1   :  { %v391_v61 = vadd.f32 %v384_v48, %v379_v56 }
 0x1d3   :  { %v409_v4 = vperm.slane %v391_v61, %v1047_v53 }
 0x1d5   :  { %v422_v11 = vsel %vm421_vm6, %v409_v4, %v420_v10 }
 0x1d8   :  { %v382_v5 = vpop.xlane.xlu1 %381 }
 0x1d9   :  { %v392_v7 = vadd.f32 %v384_v48, %v382_v5 }
 0x1db   :  { %v410_v9 = vperm.slane %v392_v7, %v1047_v53 }
 0x1dd   :  { %v424_v12 = vsel %vm423_vm7, %v410_v9, %v422_v11 }
 0x1de   :  { %v427_v13 = vsel %vm426_vm8, %v424_v12, -inf }
 0x1df   :  { %428 = vmax.xlane.f32.xlu2 %v427_v13 }
 0x252   :  { %v429_v15 = vpop.xlane.xlu2 %428 }
 0x253   :  { %v433_v16 = vperm.slane %v429_v15, 2  ;;  %v432_v17 = vperm.slane %v429_v15, 1  ;;  %v431_v18 = vperm.slane %v429_v15, 0  ;;  %v434_v22 = vperm.slane %v429_v15, 3 }
 0x254   :  { %v435_v23 = vperm.slane %v429_v15, 4  ;;  %v438_v24 = vperm.slane %v429_v15, 7  ;;  %v436_v32 = vperm.slane %v429_v15, 5  ;;  %v437_v34 = vperm.slane %v429_v15, 6 }
 0x255   :  { %v449_v19 = vsub.f32 %v387_v51, %v433_v16  ;;  %v448_v20 = vsub.f32 %v386_v50, %v432_v17  ;;  %v447_v21 = vsub.f32 %v385_v54, %v431_v18  ;;  %v450_v28 = vsub.f32 %v388_v55, %v434_v22 }
 0x256   :  { %v451_v29 = vsub.f32 %v389_v57, %v435_v23  ;;  %v454_v30 = vsub.f32 %v392_v7, %v438_v24  ;;  %v452_v39 = vsub.f32 %v390_v59, %v436_v32  ;;  %v453_v40 = vsub.f32 %v391_v61, %v437_v34  ;;  %v114_v34 = vld [vmem:[#allocation3 + $0xc] sm:$0xff]  }
 0x257   :  { %v459_v25 = vmul.f32 1.442695, %v449_v19  ;;  %v457_v26 = vmul.f32 1.442695, %v448_v20  ;;  %v455_v27 = vmul.f32 1.442695, %v447_v21 }
 0x258   :  { %v461_v31 = vmul.f32 1.442695, %v450_v28  ;;  %v463_v33 = vmul.f32 1.442695, %v451_v29  ;;  %v469_v36 = vmul.f32 1.442695, %v454_v30 }
 0x259   :  { %774 = vpow2.f32 %v459_v25  ;;  %v465_v41 = vmul.f32 1.442695, %v452_v39  ;;  %v467_v42 = vmul.f32 1.442695, %v453_v40 }
 0x25a   :  { %776 = vpow2.f32 %v457_v26  ;;  %v112_v26 = vld [vmem:[#allocation3 + $0x4] sm:$0xff]  }
 0x25b   :  { %778 = vpow2.f32 %v455_v27  ;;  %v111_v27 = vld [vmem:[#allocation3] sm:$0xf]  ;;  %v549_v28 = vunpack.c.l.bf16 %v112_v26 }
 0x25c   :  { %780 = vpow2.f32 %v461_v31  ;;  %v548_v29 = vunpack.c.l.bf16 %v111_v27 }
 0x25d   :  { %782 = vpow2.f32 %v463_v33 }
 0x25e   :  { %784 = vpow2.f32 %v469_v36 }
 0x25f   :  { %v1065_v35 = vpop.eup %774  ;;  %786 = vpow2.f32 %v465_v41 }
 0x260   :  { %v777_v37 = vpop.eup %776  ;;  %486 = vperm.xlu2 %770, %v1065_v35   ;;  %788 = vpow2.f32 %v467_v42 }
 0x261   :  { %v779_v38 = vpop.eup %778  ;;  %483 = vperm.xlu1 %769, %v777_v37  }
 0x262   :  { %480 = vperm.xlu0 %768, %v779_v38   ;;  %v781_v43 = vpop.eup %780 }
 0x263   :  { %v783_v44 = vpop.eup %782 }
 0x264   :  { %v785_v45 = vpop.eup %784 }
 0x265   :  { %v787_v46 = vpop.eup %786 }
 0x266   :  { %v789_v47 = vpop.eup %788 }
 0x268   :  { %489 = vperm.xlu2 %770, %v781_v43  }
 0x269   :  { %492 = vperm.xlu1 %769, %v783_v44  }
 0x26a   :  { %501 = vperm.xlu0 %768, %v785_v45  }
 0x270   :  { %495 = vperm.xlu2 %770, %v787_v46  }
 0x271   :  { %498 = vperm.xlu1 %769, %v789_v47  }
 0x2ba   :  { %v487_v48 = vpop.permute.xlu2 %486 }
 0x2bb   :  { %v505_v57 = vperm.slane %v487_v48, %v1047_v53 }
 0x2c2   :  { %v490_v51 = vpop.permute.xlu2 %489 }
 0x2c3   :  { %v506_v60 = vperm.slane %v490_v51, %v1047_v53 }
 0x2ca   :  { %v496_v61 = vpop.permute.xlu2 %495 }
 0x2cb   :  { %v508_v1 = vperm.slane %v496_v61, %v1047_v53 }
 0x2d3   :  { %v484_v49 = vpop.permute.xlu1 %483 }
 0x2d4   :  { %v481_v50 = vpop.permute.xlu0 %480  ;;  %v504_v52 = vperm.slane %v484_v49, %v1047_v53 }
 0x2d5   :  { %v503_v54 = vperm.slane %v481_v50, %v1047_v53 }
 0x2d7   :  { %v511_v55 = vsel %vm411_vm1, %v504_v52, %v503_v54  ;;  %v552_v54 = vunpack.c.h.bf16 %v114_v34 }
 0x2d8   :  { %v512_v58 = vsel %vm413_vm2, %v505_v57, %v511_v55 }
 0x2d9   :  { %v513_v62 = vsel %vm415_vm3, %v506_v60, %v512_v58 }
 0x2db   :  { %v493_v56 = vpop.permute.xlu1 %492 }
 0x2dc   :  { %v507_v59 = vperm.slane %v493_v56, %v1047_v53  ;;  %v502_v0 = vpop.permute.xlu0 %501 }
 0x2dd   :  { %v510_v4 = vperm.slane %v502_v0, %v1047_v53 }
 0x2de   :  { %v514_v63 = vsel %vm417_vm4, %v507_v59, %v513_v62 }
 0x2df   :  { %v515_v5 = vsel %vm419_vm5, %v508_v1, %v514_v63 }
 0x2e3   :  { %v499_v2 = vpop.permute.xlu1 %498 }
 0x2e4   :  { %v509_v3 = vperm.slane %v499_v2, %v1047_v53  ;;  %v118_v2 = vld [vmem:[#allocation3 + $0x1c] sm:$0xf] }
 0x2e6   :  { %v516_v6 = vsel %vm421_vm6, %v509_v3, %v515_v5 }
 0x2e7   :  { %v517_v7 = vsel %vm423_vm7, %v510_v4, %v516_v6 }
 0x2e8   :  { %v519_v8 = vsel %vm426_vm8, %v517_v7, 0.0 }
 0x2e9   :  { %520 = vadd.xlane.f32.xlu2 %v519_v8 }
 0x35c   :  { %v521_v9 = vpop.xlane.xlu2 %520 }
 0x35d   :  { %790 = vrcp.f32 %v521_v9  ;;  %v555_v9 = vunpack.c.l.bf16 %v118_v2 }
 0x363   :  { %v791_v10 = vpop.eup %790 }
 0x364   :  { %v525_v11 = vperm.slane %v791_v10, 1  ;;  %v524_v12 = vperm.slane %v791_v10, 0  ;;  %v527_v15 = vperm.slane %v791_v10, 3  ;;  %v526_v53 = vperm.slane %v791_v10, 2 }
 0x365   :  { %v529_v18 = vperm.slane %v791_v10, 5  ;;  %v528_v19 = vperm.slane %v791_v10, 4  ;;  %v531_v22 = vperm.slane %v791_v10, 7  ;;  %v530_v23 = vperm.slane %v791_v10, 6 }
 0x366   :  { %v541_v13 = vmul.f32 %v777_v37, %v525_v11  ;;  %v540_v14 = vmul.f32 %v779_v38, %v524_v12  ;;  %v543_v16 = vmul.f32 %v781_v43, %v527_v15  ;;  %v542_v17 = vmul.f32 %v1065_v35, %v526_v53 }
 0x367   :  { %v545_v20 = vmul.f32 %v787_v46, %v529_v18  ;;  %v544_v21 = vmul.f32 %v783_v44, %v528_v19  ;;  %v547_v24 = vmul.f32 %v785_v45, %v531_v22  ;;  %v546_v25 = vmul.f32 %v789_v47, %v530_v23  ;;  %v116_v47 = vld [vmem:[#allocation3 + $0x14] sm:$0xff]  }
 0x368   :  { %563 = vperm.xlu0 %768, %v541_v13   ;;  %558 = vperm.xlu1 %769, %v540_v14   ;;  %v551_v37 = vunpack.c.l.bf16 %v114_v34  ;;  %v550_v38 = vunpack.c.h.bf16 %v112_v26  ;;  %v553_v52 = vunpack.c.l.bf16 %v116_v47  ;;  %v554_v10 = vunpack.c.h.bf16 %v116_v47 }
 0x370   :  { %573 = vperm.xlu0 %768, %v543_v16   ;;  %568 = vperm.xlu1 %769, %v542_v17  }
 0x378   :  { %583 = vperm.xlu0 %768, %v545_v20   ;;  %578 = vperm.xlu1 %769, %v544_v21  }
 0x380   :  { %593 = vperm.xlu0 %768, %v547_v24   ;;  %588 = vperm.xlu1 %769, %v546_v25  }
 0x3da   :  { %v564_v30 = vpop.permute.xlu0 %563  ;;  %v559_v31 = vpop.permute.xlu1 %558 }
 0x3db   :  { %v597_v32 = vmul.f32 %v564_v30, %v549_v28  ;;  %v596_v33 = vmul.f32 %v559_v31, %v548_v29 }
 0x3dd   :  { %v611_v35 = vsel %vm136_vm0, %v597_v32, 0.0  ;;  %v604_v36 = vsel %vm136_vm0, %v596_v33, 0.0 }
 0x3de   :  { %v612_v39 = vrot.slane %v611_v35, 4  ;;  %v605_v40 = vrot.slane %v604_v36, 4 }
 0x3e0   :  { %v613_v45 = vadd.f32 %v612_v39, %v611_v35  ;;  %v606_v46 = vadd.f32 %v605_v40, %v604_v36 }
 0x3e2   :  { %v574_v41 = vpop.permute.xlu0 %573  ;;  %v569_v42 = vpop.permute.xlu1 %568  ;;  %v614_v55 = vrot.slane %v613_v45, 2  ;;  %v607_v56 = vrot.slane %v606_v46, 2 }
 0x3e3   :  { %v599_v43 = vmul.f32 %v574_v41, %v551_v37  ;;  %v598_v44 = vmul.f32 %v569_v42, %v550_v38 }
 0x3e4   :  { %v615_v0 = vadd.f32 %v614_v55, %v613_v45  ;;  %v608_v1 = vadd.f32 %v607_v56, %v606_v46 }
 0x3e5   :  { %v625_v48 = vsel %vm136_vm0, %v599_v43, 0.0  ;;  %v618_v49 = vsel %vm136_vm0, %v598_v44, 0.0 }
 0x3e6   :  { %v626_v50 = vrot.slane %v625_v48, 4  ;;  %v619_v51 = vrot.slane %v618_v49, 4  ;;  %v616_v11 = vrot.slane %v615_v0, 1  ;;  %v609_v12 = vrot.slane %v608_v1, 1 }
 0x3e8   :  { %v620_v57 = vadd.f32 %v619_v51, %v618_v49  ;;  %v627_v58 = vadd.f32 %v626_v50, %v625_v48  ;;  %v617_v22 = vadd.f32 %v616_v11, %v615_v0  ;;  %v610_v23 = vadd.f32 %v609_v12, %v608_v1 }
 0x3ea   :  { %v621_v59 = vrot.slane %v620_v57, 2  ;;  %v584_v60 = vpop.permute.xlu0 %583  ;;  %v579_v61 = vpop.permute.xlu1 %578  ;;  %v628_v3 = vrot.slane %v627_v58, 2  ;;  %v668_v35 = vsel %vm411_vm1, %v617_v22, %v610_v23 }
 0x3eb   :  { %v601_v62 = vmul.f32 %v584_v60, %v553_v52  ;;  %v600_v63 = vmul.f32 %v579_v61, %v552_v54 }
 0x3ec   :  { %v622_v6 = vadd.f32 %v621_v59, %v620_v57  ;;  %v629_v15 = vadd.f32 %v628_v3, %v627_v58 }
 0x3ed   :  { %v639_v4 = vsel %vm136_vm0, %v601_v62, 0.0  ;;  %v632_v5 = vsel %vm136_vm0, %v600_v63, 0.0 }
 0x3ee   :  { %v640_v7 = vrot.slane %v639_v4, 4  ;;  %v633_v8 = vrot.slane %v632_v5, 4  ;;  %v623_v53 = vrot.slane %v622_v6, 1  ;;  %v630_v25 = vrot.slane %v629_v15, 1 }
 0x3f0   :  { %v641_v13 = vadd.f32 %v640_v7, %v639_v4  ;;  %v634_v14 = vadd.f32 %v633_v8, %v632_v5  ;;  %v624_v29 = vadd.f32 %v623_v53, %v622_v6  ;;  %v631_v36 = vadd.f32 %v630_v25, %v629_v15 }
 0x3f2   :  { %v642_v16 = vrot.slane %v641_v13, 2  ;;  %v635_v17 = vrot.slane %v634_v14, 2  ;;  %v594_v18 = vpop.permute.xlu0 %593  ;;  %v589_v19 = vpop.permute.xlu1 %588  ;;  %v669_v38 = vsel %vm413_vm2, %v624_v29, %v668_v35 }
 0x3f3   :  { %v603_v20 = vmul.f32 %v594_v18, %v555_v9  ;;  %v602_v21 = vmul.f32 %v589_v19, %v554_v10  ;;  %v670_v45 = vsel %vm415_vm3, %v631_v36, %v669_v38 }
 0x3f4   :  { %v636_v24 = vadd.f32 %v635_v17, %v634_v14  ;;  %v643_v26 = vadd.f32 %v642_v16, %v641_v13 }
 0x3f5   :  { %v653_v27 = vsel %vm136_vm0, %v603_v20, 0.0  ;;  %v646_v28 = vsel %vm136_vm0, %v602_v21, 0.0 }
 0x3f6   :  { %v637_v30 = vrot.slane %v636_v24, 1  ;;  %v654_v31 = vrot.slane %v653_v27, 4  ;;  %v647_v32 = vrot.slane %v646_v28, 4  ;;  %v644_v37 = vrot.slane %v643_v26, 1 }
 0x3f8   :  { %v655_v33 = vadd.f32 %v654_v31, %v653_v27  ;;  %v648_v34 = vadd.f32 %v647_v32, %v646_v28  ;;  %v638_v39 = vadd.f32 %v637_v30, %v636_v24  ;;  %v645_v44 = vadd.f32 %v644_v37, %v643_v26 }
 0x3fa   :  { %v656_v40 = vrot.slane %v655_v33, 2  ;;  %v649_v41 = vrot.slane %v648_v34, 2  ;;  %v671_v46 = vsel %vm417_vm4, %v638_v39, %v670_v45 }
 0x3fb   :  { %v672_v51 = vsel %vm419_vm5, %v645_v44, %v671_v46 }
 0x3fc   :  { %v657_v42 = vadd.f32 %v656_v40, %v655_v33  ;;  %v650_v43 = vadd.f32 %v649_v41, %v648_v34 }
 0x3fe   :  { %v658_v47 = vrot.slane %v657_v42, 1  ;;  %v651_v48 = vrot.slane %v650_v43, 1 }
 0x400   :  { %v659_v49 = vadd.f32 %v658_v47, %v657_v42  ;;  %v652_v50 = vadd.f32 %v651_v48, %v650_v43 }
 0x402   :  { %v673_v52 = vsel %vm421_vm6, %v652_v50, %v672_v51 }
 0x403   :  { %v674_v54 = vsel %vm423_vm7, %v659_v49, %v673_v52 }
 0x404   :  { %676 = vst.msk [vmem:[#allocation12] sm:$0xff] %vm136_vm0, %v674_v54 }
 0x405   :  { %687 = dma.vmem_to_hbm [thread:$0]  %s683_s15, 128, %s685_s18, [#allocation5]  }
 0x406   :  { %942 = dma.done.wait [#allocation5], 128  }
 0x407   :  { %943 = vsyncadd [#allocation5], 4294967168 }
 0x408   :  { %692 = vsyncpa [#allocation4], 1 }
 0x409   :  { %693 = vsyncpa [#allocation7], 1 }
 0x40a   :  { %694 = vsyncpa [#allocation10], 1 }
 0x40b   :  { %695 = vsyncpa [#allocation5], 1 }

</bundles_post_ra>
